<compile_context>
chip_gen: v7x
topology: tpu7x:2x2x1
jax: 0.10.0
libtpu: 0.0.40
codegen_flags: <defaults>
</compile_context>

<pallas_src>
import functools

import jax
import jax.numpy as jnp
from jax.experimental import pallas as pl
from jax.experimental.pallas import tpu as pltpu


def _round_up(x, m):
    return ((x + m - 1) // m) * m


def _largest_tile(extent, max_tile, unit):
    """Largest multiple of `unit` that divides `extent` and is <= max_tile.

    `extent` must already be a multiple of `unit`."""
    t = min(max_tile, extent)
    t = max((t // unit) * unit, unit)
    while extent % t != 0:
        t -= unit
    return t


def _vmem_budget_bytes():
    """Per-generation VMEM budget for the pipelined blocks."""
    try:
        cap = int(pltpu.get_tpu_info().vmem_capacity_bytes)
    except Exception:
        cap = 128 << 20
    if cap <= (64 << 20):        # v7x: 64 MiB per TC -> leave Mosaic headroom
        return 46 << 20
    return 100 << 20             # v5e / v6e: 128 MiB physical


# ---------------------------------------------------------------------------
# Kernels
# ---------------------------------------------------------------------------

def _fh_kernel_single_k(x_ref, w_ref, b_ref, o_ref):
    # Whole K in one block: no accumulator scratch, no init/finalize branches.
    acc = jnp.dot(x_ref[...], w_ref[...], preferred_element_type=jnp.float32)
    o_ref[...] = (acc + b_ref[...]).astype(o_ref.dtype)


def _fh_kernel_multi_k(x_ref, w_ref, b_ref, o_ref, acc_ref):
    k = pl.program_id(2)

    @pl.when(k == 0)
    def _():
        acc_ref[...] = jnp.zeros_like(acc_ref)

    acc_ref[...] += jnp.dot(x_ref[...], w_ref[...],
                            preferred_element_type=jnp.float32)

    @pl.when(k == pl.num_programs(2) - 1)
    def _():
        o_ref[...] = (acc_ref[...] + b_ref[...]).astype(o_ref.dtype)


# ---------------------------------------------------------------------------
# Parameter preparation (runs ONCE, outside the hot path)
# ---------------------------------------------------------------------------

def prepare_flatten_head_params(weight, bias, compute_dtype=jnp.bfloat16):
    """Pad weight/bias to 128-aligned shapes and cast weight to the MXU dtype.

    weight: [nf, target_window] (x @ W layout), bias: [target_window].
    The padded region is explicitly zero-filled so padded K columns / N rows
    contribute nothing to the matmul."""
    nf, T = weight.shape
    nfp = _round_up(nf, 128)
    Tp = _round_up(T, 128)
    w_p = jnp.zeros((nfp, Tp), compute_dtype).at[:nf, :T].set(
        weight.astype(compute_dtype))
    # Bias stays f32: the epilogue add is done in f32 regardless of compute dtype.
    b_p = jnp.zeros((1, Tp), jnp.float32).at[0, :T].set(bias.astype(jnp.float32))
    return w_p, b_p


# ---------------------------------------------------------------------------
# Forward
# ---------------------------------------------------------------------------

@functools.partial(
    jax.jit, static_argnames=("target_window", "tile_m", "tile_n", "tile_k"))
def flatten_head_forward(x, w_padded, b_padded, *, target_window,
                         tile_m=512, tile_n=512, tile_k=None):
    """x: [B, n_vars, d_model, patch_num]; w_padded: [nfp, Tp]; b_padded: [1, Tp]."""
    B, n_vars, d_model, patch_num = x.shape
    nf = d_model * patch_num
    nfp, Tp = w_padded.shape
    T = target_window
    assert nfp == _round_up(nf, 128) and Tp == _round_up(T, 128) and Tp >= T

    compute_dtype = w_padded.dtype
    out_dtype = x.dtype
    itemsize = jnp.dtype(compute_dtype).itemsize
    out_b = jnp.dtype(out_dtype).itemsize
    sub = 8 if itemsize >= 4 else (16 if itemsize == 2 else 32)

    # Flatten(start_dim=-2) then collapse leading dims -> [M, nf].
    M = B * n_vars
    x2d = x.reshape(M, nf)
    if x2d.dtype != compute_dtype:
        x2d = x2d.astype(compute_dtype)

    vmem_budget = _vmem_budget_bytes()
    if tile_k is None:
        big_vmem = vmem_budget > (48 << 20)          # v5e/v6e vs v7x
        if itemsize <= 2:
            tile_k = 8192 if big_vmem else 4096
        else:
            tile_k = 4096 if big_vmem else 2048

    # --- M tiling: M is small (B * n_vars); round up to the sublane unit. ---
    Mp = _round_up(M, sub)
    tm = min(tile_m, Mp)
    Mp = _round_up(Mp, tm)

    # --- N tiling: Tp is already 128-aligned; tn must divide it (lane dense). ---
    tn = _largest_tile(Tp, tile_n, 128)
    # v7x megacore: guarantee >=2 blocks on a parallel axis when M has 1 block.
    if Mp // tm == 1 and Tp // tn == 1 and Tp >= 256:
        tn = _largest_tile(Tp, Tp // 2, 128)

    # --- K tiling: nfp is 128-aligned; tk must divide it. Shrink if the
    #     double-buffered block budget would exceed the VMEM budget. ---
    tk = _largest_tile(nfp, tile_k, 128)

    def _block_bytes(tk_):
        b = 2 * (tm * tk_ * itemsize + tk_ * tn * itemsize + tn * 4)
        b += 2 * tm * tn * out_b
        if nfp // tk_ > 1:
            b += tm * tn * 4                     # f32 accumulator scratch
        return b

    while tk > 128 and _block_bytes(tk) > vmem_budget:
        tk = _largest_tile(nfp, tk - 128, 128)

    # Pad the activation only if actually needed (zeros are inert in the dot).
    if Mp != M or nfp != nf:
        x2d = jnp.pad(x2d, ((0, Mp - M), (0, nfp - nf)))

    grid_m, grid_n, grid_k = Mp // tm, Tp // tn, nfp // tk

    vmem_limit = int(min(max(_block_bytes(tk) * 3 // 2, 16 << 20), vmem_budget))

    cost = pl.CostEstimate(
        flops=2 * Mp * nfp * Tp,
        transcendentals=0,
        bytes_accessed=(Mp * nfp * itemsize + nfp * Tp * itemsize
                        + Tp * 4 + Mp * Tp * out_b),
    )

    if grid_k == 1:
        kernel = _fh_kernel_single_k
        grid = (grid_m, grid_n)
        in_specs = [
            pl.BlockSpec((tm, tk), lambda i, j: (i, 0)),
            pl.BlockSpec((tk, tn), lambda i, j: (0, j)),
            pl.BlockSpec((1, tn), lambda i, j: (0, j)),
        ]
        out_specs = pl.BlockSpec((tm, tn), lambda i, j: (i, j))
        scratch = []
        dims = ("parallel", "parallel")
    else:
        kernel = _fh_kernel_multi_k
        grid = (grid_m, grid_n, grid_k)
        in_specs = [
            pl.BlockSpec((tm, tk), lambda i, j, k: (i, k)),
            pl.BlockSpec((tk, tn), lambda i, j, k: (k, j)),
            pl.BlockSpec((1, tn), lambda i, j, k: (0, j)),
        ]
        out_specs = pl.BlockSpec((tm, tn), lambda i, j, k: (i, j))
        scratch = [pltpu.VMEM((tm, tn), jnp.float32)]
        dims = ("parallel", "parallel", "arbitrary")

    out = pl.pallas_call(
        kernel,
        out_shape=jax.ShapeDtypeStruct((Mp, Tp), out_dtype),
        grid_spec=pltpu.PrefetchScalarGridSpec(
            num_scalar_prefetch=0,
            grid=grid,
            in_specs=in_specs,
            out_specs=out_specs,
            scratch_shapes=scratch,
        ),
        compiler_params=pltpu.CompilerParams(
            dimension_semantics=dims,
            vmem_limit_bytes=vmem_limit,
        ),
        cost_estimate=cost,
    )(x2d, w_padded, b_padded)

    # Dropout(head_dropout=0): identity.
    return out[:M, :T].reshape(B, n_vars, T)


# ---------------------------------------------------------------------------
# Example / correctness check
# ---------------------------------------------------------------------------

if __name__ == "__main__":
    key = jax.random.PRNGKey(0)
    kx, kw, kb = jax.random.split(key, 3)

    # Small shapes consistent with the module's forward.
    B, n_vars, d_model, patch_num = 2, 4, 8, 4
    nf = d_model * patch_num          # 32
    target_window = 16

    bound = 1.0 / (nf ** 0.5)          # nn.Linear default init range
    x = jax.random.normal(kx, (B, n_vars, d_model, patch_num), jnp.float32)
    weight = jax.random.uniform(kw, (nf, target_window), jnp.float32, -bound, bound)
    bias = jax.random.uniform(kb, (target_window,), jnp.float32, -bound, bound)

    # Reference: Flatten + Linear in plain JAX (f32).
    ref = x.reshape(B, n_vars, nf) @ weight + bias

    # f32 compute path (tight numeric check of the kernel math).
    w32, b32 = prepare_flatten_head_params(weight, bias, compute_dtype=jnp.float32)
    out32 = jax.block_until_ready(
        flatten_head_forward(x, w32, b32, target_window=target_window))
    assert out32.shape == (B, n_vars, target_window)
    assert jnp.allclose(out32, ref, atol=1e-5, rtol=1e-5)

    # bf16 compute path (default for deployment: weight-HBM-bound GEMM).
    wbf, bbf = prepare_flatten_head_params(weight, bias, compute_dtype=jnp.bfloat16)
    outbf = jax.block_until_ready(
        flatten_head_forward(x, wbf, bbf, target_window=target_window))
    assert outbf.shape == (B, n_vars, target_window)
    assert jnp.allclose(outbf, ref, atol=5e-2, rtol=5e-2)

    print("KERNEL_OK")
</pallas_src>

<mosaic_0001>
module attributes {stable_mosaic.version = 11 : i64} {
  func.func @_fh_kernel_single_k(%arg0: i32, %arg1: i32, %arg2: memref<8x128xf32, #tpu.memory_space<vmem>>, %arg3: memref<128x128xf32, #tpu.memory_space<vmem>>, %arg4: memref<1x128xf32, #tpu.memory_space<vmem>>, %arg5: memref<8x128xf32, #tpu.memory_space<vmem>>) attributes {dimension_semantics = [#tpu.dimension_semantics<parallel>, #tpu.dimension_semantics<parallel>], iteration_bounds = array<i64: 1, 1>, scalar_prefetch = 0 : i64, scratch_operands = 0 : i64, tpu.core_type = #tpu.core_type<tc>, window_params = [{transform_indices = @transform_0, window_bounds = array<i64: 8, 128>}, {transform_indices = @transform_1, window_bounds = array<i64: 128, 128>}, {transform_indices = @transform_2, window_bounds = array<i64: 1, 128>}, {transform_indices = @transform_3, window_bounds = array<i64: 8, 128>}]} {
    %c0 = arith.constant 0 : index
    %c0_0 = arith.constant 0 : index
    %0 = vector.load %arg2[%c0, %c0_0] : memref<8x128xf32, #tpu.memory_space<vmem>>, vector<8x128xf32>
    %c0_1 = arith.constant 0 : index
    %c0_2 = arith.constant 0 : index
    %1 = vector.load %arg3[%c0_1, %c0_2] : memref<128x128xf32, #tpu.memory_space<vmem>>, vector<128x128xf32>
    %cst = arith.constant dense<0.000000e+00> : vector<8x128xf32>
    %2 = tpu.matmul %0, %1, %cst {dimension_numbers = #tpu.dot_dimension_numbers<[1], [0], [0], [1], [0, 0, 1, 1], [], []>} : vector<8x128xf32>, vector<128x128xf32>, vector<8x128xf32> -> vector<8x128xf32>
    %c0_3 = arith.constant 0 : index
    %c0_4 = arith.constant 0 : index
    %3 = vector.load %arg4[%c0_3, %c0_4] : memref<1x128xf32, #tpu.memory_space<vmem>>, vector<1x128xf32>
    %4 = vector.broadcast %3 : vector<1x128xf32> to vector<8x128xf32>
    %5 = arith.addf %2, %4 : vector<8x128xf32>
    %c0_5 = arith.constant 0 : index
    %c0_6 = arith.constant 0 : index
    %6 = vector.load %arg5[%c0_5, %c0_6] : memref<8x128xf32, #tpu.memory_space<vmem>>, vector<8x128xf32>
    tpu.vector_store %arg5[%c0_5, %c0_6], %5 {strides = array<i32>} : memref<8x128xf32, #tpu.memory_space<vmem>>, vector<8x128xf32>,
    return
  }
  func.func @transform_0(%arg0: i32, %arg1: i32) -> (i32, i32) {
    %c0_i32 = arith.constant 0 : i32
    %c0_i32_0 = arith.constant 0 : i32
    return %arg0, %c0_i32 : i32, i32
  }
  func.func @transform_1(%arg0: i32, %arg1: i32) -> (i32, i32) {
    %c0_i32 = arith.constant 0 : i32
    %c0_i32_0 = arith.constant 0 : i32
    return %c0_i32, %arg1 : i32, i32
  }
  func.func @transform_2(%arg0: i32, %arg1: i32) -> (i32, i32) {
    %c0_i32 = arith.constant 0 : i32
    %c0_i32_0 = arith.constant 0 : i32
    return %c0_i32, %arg1 : i32, i32
  }
  func.func @transform_3(%arg0: i32, %arg1: i32) -> (i32, i32) {
    %c0_i32 = arith.constant 0 : i32
    return %arg0, %arg1 : i32, i32
  }
}

</mosaic_0001>

<bundles_post_ra>
// kernel: flatten_head_forward.1
= control target key start
LH: loop header
LB: loop body
LE: loop exit
PB: predicated region body
PF: predicated region fallthrough
CT: control target
= control target key end

     0   :  { %v229_v3 = vmov 0.0|0.0   ;;  %vm230_vm0 = vmmov 0   ;;  %v231_v6 = vmov 0.0   ;;  %s319_s0 = inlined_call_operand.vmem [shape: f32[8,128], index: 0, kind: input, shape index: {}]   ;;  %s320_s1 = inlined_call_operand.vmem [shape: f32[128,128], index: 1, kind: input, shape index: {}]   ;;  %s321_s2 = inlined_call_operand.vmem [shape: f32[1,128], index: 2, kind: input, shape index: {}]   ;;  %s322_s3 = inlined_call_operand.hbm [shape: f32[8,128], index: 3, kind: output, shape index: {}]  }
   0x1   :  { %v16_v0 = vld [vmem:[%s320_s1] sm:$0xff]  ;;  %v17_v1 = vld [vmem:[%s320_s1 + $0x8] sm:$0xff]  ;;  %v18_v2 = vld [vmem:[%s320_s1 + $0x10] sm:$0xff]  ;;  %177 = vmatprep.subr.bf16.mxu0 %v229_v3  ;;  %174 = vmatprep.mubr.msk.f32.mxu0 %vm230_vm0, %v231_v6 }
   0x2   :  { %v178_v4 = vpack.c.bf16 %v17_v1, %v16_v0  ;;  %v19_v5 = vld [vmem:[%s320_s1 + $0x18] sm:$0xff]  ;;  %v20_v8 = vld [vmem:[%s320_s1 + $0x20] sm:$0xff]  ;;  %v21_v9 = vld [vmem:[%s320_s1 + $0x28] sm:$0xff] }
   0x3   :  { %v181_v7 = vpack.c.bf16 %v19_v5, %v18_v2 }
   0x4   :  { %179 = vmatpush3.bf16.msra.mxu0 %v178_v4 }
   0x5   :  { %180 = vmatprep.subr.bf16.mxu0 %v229_v3 }
   0x6   :  { %8 = vsyncpa [#allocation3], 0  ;;  %v184_v10 = vpack.c.bf16 %v21_v9, %v20_v8  ;;  %v22_v11 = vld [vmem:[%s320_s1 + $0x30] sm:$0xff]  ;;  %v23_v12 = vld [vmem:[%s320_s1 + $0x38] sm:$0xff]  ;;  %s232_s21 = smov [#allocation2]  }
   0x7   :  { %v187_v13 = vpack.c.bf16 %v23_v12, %v22_v11  ;;  %v24_v14 = vld [vmem:[%s320_s1 + $0x40] sm:$0xff]  ;;  %v25_v15 = vld [vmem:[%s320_s1 + $0x48] sm:$0xff]  ;;  %v26_v17 = vld [vmem:[%s320_s1 + $0x50] sm:$0xff]  ;;  %s116_s22 = sshll.u32 %s232_s21, 4  ;;  %s117_s22 = int_to_ptr.vmem [resolvable:$true] %s116_s22 }
   0x8   :  { %182 = vmatpush3.bf16.msra.mxu0 %v181_v7  ;;  %v190_v16 = vpack.c.bf16 %v25_v15, %v24_v14  ;;  %v27_v18 = vld [vmem:[%s320_s1 + $0x58] sm:$0xff]  ;;  %v28_v20 = vld [vmem:[%s320_s1 + $0x60] sm:$0xff]  ;;  %v29_v21 = vld [vmem:[%s320_s1 + $0x68] sm:$0xff]  ;;  %p210_p1 = scmp.lt.s32.totalorder %s117_s22, %s117_s22 }
   0x9   :  { %183 = vmatprep.subr.bf16.mxu0 %v229_v3  ;;  %v193_v19 = vpack.c.bf16 %v27_v18, %v26_v17  ;;  %v196_v22 = vpack.c.bf16 %v29_v21, %v28_v20  ;;  %v30_v23 = vld [vmem:[%s320_s1 + $0x70] sm:$0xff]  ;;  %v31_v24 = vld [vmem:[%s320_s1 + $0x78] sm:$0xff]  ;;  %v15_v26 = vld [vmem:[%s319_s0] sm:$0xff]  ;;  %s205_s1 = scalar_lea.vmem %s117_s22, 128 }
   0xa   :  { %v199_v25 = vpack.c.bf16 %v31_v24, %v30_v23  ;;  %v124_v27 = vld [vmem:[%s321_s2] ss:$0 sm:$0xff]  ;;  %p206_p0 = scmp.ne.s32.totalorder %s117_s22, %s205_s1  ;;  %p211_p2 = scmp.lt.s32.totalorder %s205_s1, %s205_s1 }
   0xc   :  { %185 = vmatpush3.bf16.msra.mxu0 %v184_v10  ;;  %p212_p3 = por %p211_p2, %p210_p1 }
   0xd   :  { %186 = vmatprep.subr.bf16.mxu0 %v229_v3 }
   0xe   :  { %p213_p4 = pnand %p212_p3, %p206_p0 }
  0x10   :  { %188 = vmatpush3.bf16.msra.mxu0 %v187_v13 }
  0x11   :  { %189 = vmatprep.subr.bf16.mxu0 %v229_v3 }
  0x14   :  { %191 = vmatpush3.bf16.msra.mxu0 %v190_v16 }
  0x15   :  { %192 = vmatprep.subr.bf16.mxu0 %v229_v3 }
  0x18   :  { %194 = vmatpush3.bf16.msra.mxu0 %v193_v19 }
  0x19   :  { %195 = vmatprep.subr.bf16.mxu0 %v229_v3 }
  0x1c   :  { %197 = vmatpush3.bf16.msra.mxu0 %v196_v22 }
  0x1d   :  { %198 = vmatprep.subr.bf16.mxu0 %v229_v3 }
  0x20   :  { %200 = vmatpush3.bf16.msra.mxu0 %v199_v25 }
  0x23   :  { %175 = vmatmul.mubr.f32.vlgmr.msra.gmra.mrb[0].mxu0 %v15_v26 }
  0xf6   :  { %v105_v28 = vpop.f32.mrb[0].mxu0 }
  0xf7   :  { %v106_v29 = vadd.f32 %v124_v27, %v105_v28  ;;  %v176_v30 = vpop.f32.mrb[1].mxu0 }
  0xf9   :  { %109 = vst [vmem:[#allocation2] sm:$0xff] %v106_v29 }
  0xfa   :  { %216 = shalt.err (!%p213_p4)
}
  0xfb   :  { %s217_s24 = scalar_lea.hbm %s322_s3, 128 }
  0xfc   :  { %p218_p5 = scmp.ne.s32.totalorder %s322_s3, %s217_s24  ;;  %p221_p6 = scmp.lt.u32.totalorder %s217_s24, %s322_s3 }
  0xfe   :  { %p223_p7 = pnand %p221_p6, %p218_p5 }
 0x100   :  { %226 = shalt.err (!%p223_p7)
}
 0x101   :  { %119 = dma.vmem_to_hbm [thread:$0]  %s117_s22, 128, %s322_s3, [#allocation3]  }
 0x102   :  { %227 = dma.done.wait [#allocation3], 128  }
 0x103   :  { %228 = vsyncadd [#allocation3], 4294967168 }
 0x104   :  { %123 = vsyncpa [#allocation3], 1 }

</bundles_post_ra>
